<compile_context>
chip_gen: v7x
topology: tpu7x:2x2x1
jax: 0.10.0
libtpu: 0.0.40
codegen_flags: <defaults>
</compile_context>

<pallas_src>
import functools

import jax
import jax.numpy as jnp
from jax.experimental import pallas as pl

LANES = 128  # lane width for the padded 3-class head output


# ------------------------------------------------------------------
# Fused BiLSTM encoder + NLI head kernel (single invocation, no grid).
# ------------------------------------------------------------------
def bilstm_nli_kernel(x_ref, wih_ref, bias_ref, whh_ref, w1_ref, b1_ref,
                      w2_ref, b2_ref, out_ref, *, T, B, H):
    R = 4 * B  # rows per timestep tile: [text_fwd | hyp_fwd | text_bwd | hyp_bwd]

    # ---- Hoisted input projection: ONE MXU matmul for all T steps, both
    # sentences and both directions.  x rows are block-diagonal over the
    # direction ([emb_t | 0] for fwd rows, [0 | emb_{T-1-t}] for bwd rows),
    # wih_ref is [[W_ih_fwd],[W_ih_bwd]] stacked on the contraction axis.
    gx = jnp.dot(x_ref[...], wih_ref[...],
                 preferred_element_type=jnp.float32)                 # (T*R, 4H)

    bias = bias_ref[...]              # (R, 4H): fwd-rows bias then bwd-rows bias
    whh = whh_ref[...]                # (2H, 4H) bf16: [[W_hh_fwd],[W_hh_bwd]]

    # Block-diagonal mask used to build the fused recurrent-matmul LHS:
    # forward rows keep lanes [0,H), backward rows keep lanes [H,2H).
    row = jax.lax.broadcasted_iota(jnp.int32, (R, 2 * H), 0)
    col = jax.lax.broadcasted_iota(jnp.int32, (R, 2 * H), 1)
    dir_mask = ((row < 2 * B) == (col < H)).astype(jnp.float32)      # (R, 2H)

    h = jnp.zeros((R, H), jnp.float32)
    c = jnp.zeros((R, H), jnp.float32)

    # ---- Recurrence: fully unrolled (T is small & static); only final states
    # are kept, in registers.  Sequential by construction (no grid axis).
    # TODO(synk): for large T switch to lax.fori_loop(..., unroll=2..4) and
    # stream gx per-timestep (VMEM) instead of keeping the full hoisted slab.
    for t in range(T):
        gx_t = gx[t * R:(t + 1) * R, :]      # aligned (R,4H) = one (8,128) tile
        # ONE MXU matmul for both directions: block-diag LHS @ stacked RHS.
        h2 = (jnp.concatenate([h, h], axis=1) * dir_mask).astype(jnp.bfloat16)
        gates = gx_t + bias + jnp.dot(h2, whh,
                                      preferred_element_type=jnp.float32)  # (R,4H)
        # ONE sigmoid + ONE tanh over the whole (R,4H) tile; slice after.
        sig = jax.nn.sigmoid(gates)
        tah = jnp.tanh(gates)
        i = sig[:, 0 * H:1 * H]
        f = sig[:, 1 * H:2 * H]
        g = tah[:, 2 * H:3 * H]
        o = sig[:, 3 * H:4 * H]
        c = f * c + i * g
        h = o * jnp.tanh(c)

    # ---- NLI head (fused epilogue).  Final h rows:
    #   [0,B)    text fwd_outputs[-1]      [B,2B)   hyp fwd_outputs[-1]
    #   [2B,3B)  text bkwd_outputs[0]      [3B,4B)  hyp bkwd_outputs[0]
    t_f, y_f = h[0:B], h[B:2 * B]
    t_b, y_b = h[2 * B:3 * B], h[3 * B:4 * B]
    feats = (t_f, t_b, y_f, y_b,                        # [text_enc, hyp_enc,
             t_f * y_f, t_b * y_b,                      #  mult_feature,
             jnp.abs(t_f - y_f), jnp.abs(t_b - y_b))    #  diff_feature]
    # features @ w1 without any lane-axis concat: 8 row-block dots, accumulated.
    hid = b1_ref[...]                                   # (1, H) broadcasts over batch
    for k, fk in enumerate(feats):
        hid = hid + jnp.dot(fk.astype(jnp.bfloat16), w1_ref[k],
                            preferred_element_type=jnp.float32)
    hid = jnp.maximum(hid, 0.0)                         # ReLU
    # TODO(synk): Dropout(p) is identity here (eval-mode semantics).

    logits = jnp.dot(hid.astype(jnp.bfloat16), w2_ref[...],
                     preferred_element_type=jnp.float32) + b2_ref[...]  # (B, 128)
    # Softmax(dim=1); padded lanes carry a -1e30 bias -> exp() == 0 exactly.
    m = jnp.max(logits, axis=1, keepdims=True)
    e = jnp.exp(logits - m)
    out_ref[...] = e / jnp.sum(e, axis=1, keepdims=True)   # exact division


# ------------------------------------------------------------------
# One-time weight packing — kept OUT of the jitted per-call graph.
# ------------------------------------------------------------------
def pack_params(params, batch_size):
    B = batch_size
    H = params["embedding"].shape[1]
    return {
        "embedding": params["embedding"],
        # [[W_ih_fwd],[W_ih_bwd]] / [[W_hh_fwd],[W_hh_bwd]] stacked on contraction axis
        "wih_blk": jnp.concatenate([params["wih_f"], params["wih_b"]],
                                   axis=0).astype(jnp.bfloat16),        # (2H, 4H)
        "whh_blk": jnp.concatenate([params["whh_f"], params["whh_b"]],
                                   axis=0).astype(jnp.bfloat16),        # (2H, 4H)
        # per-row bias for the (4B, 4H) timestep tile: fwd rows then bwd rows
        "bias_blk": jnp.concatenate([jnp.tile(params["b_f"], (2 * B, 1)),
                                     jnp.tile(params["b_b"], (2 * B, 1))],
                                    axis=0),                            # (4B, 4H)
        "w1r": params["w1"].reshape(8, H, H).astype(jnp.bfloat16),      # row blocks
        "b1": params["b1"],
        # lane-padded 3-class head (lane-dense (B,128) output slab)
        "w2p": jnp.zeros((H, LANES), jnp.float32)
                  .at[:, :3].set(params["w2"]).astype(jnp.bfloat16),
        "b2p": jnp.full((1, LANES), -1e30, jnp.float32)
                  .at[:, :3].set(params["b2"]),
    }


# ------------------------------------------------------------------
# Full model forward (embedding lookup + per-step layout in plain JAX).
# ------------------------------------------------------------------
@jax.jit
def bilstm_nli_forward(text_batch, text_lengths, hyp_batch, hyp_lengths, packed):
    # TODO(synk): text_lengths / hyp_lengths (pack_padded_sequence masking) are
    # not applied; all sequences are treated as full length T.
    del text_lengths, hyp_lengths

    T, B = text_batch.shape
    H = packed["embedding"].shape[1]

    tokens = jnp.concatenate([text_batch, hyp_batch], axis=1)        # (T, 2B)
    emb = jnp.take(packed["embedding"], tokens, axis=0)              # (T, 2B, H)
    zeros = jnp.zeros_like(emb)
    # Per-timestep (4B, 2H) block-diagonal tile:
    #   rows [0,2B)  = [emb[t]       | 0]   (forward direction, timestep t)
    #   rows [2B,4B) = [0 | emb[T-1-t]]     (backward direction, timestep T-1-t)
    x_blk = jnp.concatenate(
        [jnp.concatenate([emb, zeros], axis=2),
         jnp.concatenate([zeros, emb[::-1]], axis=2)], axis=1)       # (T, 4B, 2H)
    x2d = x_blk.reshape(T * 4 * B, 2 * H).astype(jnp.bfloat16)       # (T*4B, 2H)

    kernel = functools.partial(bilstm_nli_kernel, T=T, B=B, H=H)
    out_pad = pl.pallas_call(
        kernel,
        out_shape=jax.ShapeDtypeStruct((B, LANES), jnp.float32),
    )(x2d, packed["wih_blk"], packed["bias_blk"], packed["whh_blk"],
      packed["w1r"], packed["b1"], packed["w2p"], packed["b2p"])
    # TODO(synk): for large B, add a "parallel" batch grid axis so v7x's two
    # TensorCores each take a shard; at B=2 it would be a no-op.
    return out_pad[:, :3]                                            # (B, 3)


# ------------------------------------------------------------------
# Deterministic parameter init (shapes follow the PyTorch module).
# ------------------------------------------------------------------
def init_params(key, vocab, hidden):
    H = hidden
    ks = jax.random.split(key, 12)
    s_rnn = 1.0 / jnp.sqrt(H)
    s_mlp1 = 1.0 / jnp.sqrt(8 * H)
    s_mlp2 = 1.0 / jnp.sqrt(H)

    def u(k, shape, s):
        return jax.random.uniform(k, shape, jnp.float32, -s, s)

    return {
        "embedding": u(ks[0], (vocab, H), 1.0),
        # forward-direction LSTM (PyTorch gate order i, f, g, o; W stored (H, 4H))
        "wih_f": u(ks[1], (H, 4 * H), s_rnn),
        "whh_f": u(ks[2], (H, 4 * H), s_rnn),
        "b_f":   u(ks[3], (1, 4 * H), s_rnn),
        # backward-direction LSTM
        "wih_b": u(ks[4], (H, 4 * H), s_rnn),
        "whh_b": u(ks[5], (H, 4 * H), s_rnn),
        "b_b":   u(ks[6], (1, 4 * H), s_rnn),
        # MLP: Linear(8H -> H), Linear(H -> 3)
        "w1": u(ks[7], (8 * H, H), s_mlp1),
        "b1": u(ks[8], (1, H), s_mlp1),
        "w2": u(ks[9], (H, 3), s_mlp2),
        "b2": u(ks[10], (1, 3), s_mlp2),
    }


if __name__ == "__main__":
    VOCAB = 50
    HIDDEN = 32
    SEQ = 8
    BATCH = 2

    key = jax.random.PRNGKey(0)
    k_par, k_text, k_hyp = jax.random.split(key, 3)

    params = init_params(k_par, VOCAB, HIDDEN)
    packed = pack_params(params, BATCH)      # one-time packing, outside jit

    text_batch = jax.random.randint(k_text, (SEQ, BATCH), 0, VOCAB, dtype=jnp.int32)
    hyp_batch = jax.random.randint(k_hyp, (SEQ, BATCH), 0, VOCAB, dtype=jnp.int32)
    text_lengths = jnp.full((BATCH,), SEQ, dtype=jnp.int32)
    hyp_lengths = jnp.full((BATCH,), SEQ, dtype=jnp.int32)

    out = bilstm_nli_forward(text_batch, text_lengths, hyp_batch, hyp_lengths, packed)
    out = jax.block_until_ready(out)

    assert out.shape == (BATCH, 3)
    assert bool(jnp.all(jnp.isfinite(out)))
    # rows sum to ~1 (exact-division softmax)
    assert bool(jnp.allclose(jnp.sum(out, axis=1), 1.0, atol=1e-3))
    print("KERNEL_OK")
</pallas_src>

<mosaic_0001>
module attributes {stable_mosaic.version = 11 : i64} {
  func.func @bilstm_nli_kernel(%arg0: memref<64x64xbf16, #tpu.memory_space<vmem>>, %arg1: memref<64x128xbf16, #tpu.memory_space<vmem>>, %arg2: memref<8x128xf32, #tpu.memory_space<vmem>>, %arg3: memref<64x128xbf16, #tpu.memory_space<vmem>>, %arg4: memref<8x32x32xbf16, #tpu.memory_space<vmem>>, %arg5: memref<1x32xf32, #tpu.memory_space<vmem>>, %arg6: memref<32x128xbf16, #tpu.memory_space<vmem>>, %arg7: memref<1x128xf32, #tpu.memory_space<vmem>>, %arg8: memref<2x128xf32, #tpu.memory_space<vmem>>) attributes {dimension_semantics = [], scalar_prefetch = 0 : i64, scratch_operands = 0 : i64, tpu.core_type = #tpu.core_type<tc>} {
    %c0 = arith.constant 0 : index
    %c0_0 = arith.constant 0 : index
    %0 = vector.load %arg0[%c0, %c0_0] : memref<64x64xbf16, #tpu.memory_space<vmem>>, vector<64x64xbf16>
    %c0_1 = arith.constant 0 : index
    %c0_2 = arith.constant 0 : index
    %1 = vector.load %arg1[%c0_1, %c0_2] : memref<64x128xbf16, #tpu.memory_space<vmem>>, vector<64x128xbf16>
    %cst = arith.constant dense<0.000000e+00> : vector<64x128xf32>
    %2 = tpu.matmul %0, %1, %cst {dimension_numbers = #tpu.dot_dimension_numbers<[1], [0], [0], [1], [0, 0, 1, 1], [], []>} : vector<64x64xbf16>, vector<64x128xbf16>, vector<64x128xf32> -> vector<64x128xf32>
    %c0_3 = arith.constant 0 : index
    %c0_4 = arith.constant 0 : index
    %3 = vector.load %arg2[%c0_3, %c0_4] : memref<8x128xf32, #tpu.memory_space<vmem>>, vector<8x128xf32>
    %c0_5 = arith.constant 0 : index
    %c0_6 = arith.constant 0 : index
    %4 = vector.load %arg3[%c0_5, %c0_6] : memref<64x128xbf16, #tpu.memory_space<vmem>>, vector<64x128xbf16>
    %5 = tpu.iota {dimensions = array<i32: 0>} : vector<8x64xi32>
    %6 = tpu.iota {dimensions = array<i32: 1>} : vector<8x64xi32>
    %c4_i32 = arith.constant 4 : i32
    %7 = vector.broadcast %c4_i32 : i32 to vector<8x64xi32>
    %8 = arith.cmpi slt, %5, %7 : vector<8x64xi32>
    %c32_i32 = arith.constant 32 : i32
    %9 = vector.broadcast %c32_i32 : i32 to vector<8x64xi32>
    %10 = arith.cmpi slt, %6, %9 : vector<8x64xi32>
    %11 = arith.xori %8, %10 : vector<8x64xi1>
    %cst_7 = arith.constant dense<true> : vector<8x64xi1>
    %12 = arith.xori %11, %cst_7 : vector<8x64xi1>
    %13 = arith.extui %12 : vector<8x64xi1> to vector<8x64xi32>
    %14 = arith.sitofp %13 : vector<8x64xi32> to vector<8x64xf32>
    %cst_8 = arith.constant 0.000000e+00 : f32
    %15 = vector.broadcast %cst_8 : f32 to vector<8x32xf32>
    %cst_9 = arith.constant 0.000000e+00 : f32
    %16 = vector.broadcast %cst_9 : f32 to vector<8x32xf32>
    %17 = vector.extract_strided_slice %2 {offsets = [0, 0], sizes = [8, 128], strides = [1, 1]} : vector<64x128xf32> to vector<8x128xf32>
    %18 = tpu.concatenate %15, %15 in 1 : vector<8x32xf32>, vector<8x32xf32> -> vector<8x64xf32>
    %19 = arith.mulf %18, %14 : vector<8x64xf32>
    %20 = arith.truncf %19 : vector<8x64xf32> to vector<8x64xbf16>
    %21 = arith.addf %17, %3 : vector<8x128xf32>
    %cst_10 = arith.constant dense<0.000000e+00> : vector<8x128xf32>
    %22 = tpu.matmul %20, %4, %cst_10 {dimension_numbers = #tpu.dot_dimension_numbers<[1], [0], [0], [1], [0, 0, 1, 1], [], []>} : vector<8x64xbf16>, vector<64x128xbf16>, vector<8x128xf32> -> vector<8x128xf32>
    %23 = arith.addf %21, %22 : vector<8x128xf32>
    %24 = arith.negf %23 : vector<8x128xf32>
    %25 = math.exp %24 : vector<8x128xf32>
    %cst_11 = arith.constant 1.000000e+00 : f32
    %26 = vector.broadcast %cst_11 : f32 to vector<8x128xf32>
    %27 = arith.addf %26, %25 : vector<8x128xf32>
    %28 = arith.divf %26, %27 : vector<8x128xf32>
    %29 = math.tanh %23 : vector<8x128xf32>
    %30 = vector.extract_strided_slice %28 {offsets = [0, 0], sizes = [8, 32], strides = [1, 1]} : vector<8x128xf32> to vector<8x32xf32>
    %31 = vector.extract_strided_slice %28 {offsets = [0, 32], sizes = [8, 32], strides = [1, 1]} : vector<8x128xf32> to vector<8x32xf32>
    %32 = vector.extract_strided_slice %29 {offsets = [0, 64], sizes = [8, 32], strides = [1, 1]} : vector<8x128xf32> to vector<8x32xf32>
    %33 = vector.extract_strided_slice %28 {offsets = [0, 96], sizes = [8, 32], strides = [1, 1]} : vector<8x128xf32> to vector<8x32xf32>
    %34 = arith.mulf %31, %16 : vector<8x32xf32>
    %35 = arith.mulf %30, %32 : vector<8x32xf32>
    %36 = arith.addf %34, %35 : vector<8x32xf32>
    %37 = math.tanh %36 : vector<8x32xf32>
    %38 = arith.mulf %33, %37 : vector<8x32xf32>
    %39 = vector.extract_strided_slice %2 {offsets = [8, 0], sizes = [8, 128], strides = [1, 1]} : vector<64x128xf32> to vector<8x128xf32>
    %40 = tpu.concatenate %38, %38 in 1 : vector<8x32xf32>, vector<8x32xf32> -> vector<8x64xf32>
    %41 = arith.mulf %40, %14 : vector<8x64xf32>
    %42 = arith.truncf %41 : vector<8x64xf32> to vector<8x64xbf16>
    %43 = arith.addf %39, %3 : vector<8x128xf32>
    %cst_12 = arith.constant dense<0.000000e+00> : vector<8x128xf32>
    %44 = tpu.matmul %42, %4, %cst_12 {dimension_numbers = #tpu.dot_dimension_numbers<[1], [0], [0], [1], [0, 0, 1, 1], [], []>} : vector<8x64xbf16>, vector<64x128xbf16>, vector<8x128xf32> -> vector<8x128xf32>
    %45 = arith.addf %43, %44 : vector<8x128xf32>
    %46 = arith.negf %45 : vector<8x128xf32>
    %47 = math.exp %46 : vector<8x128xf32>
    %cst_13 = arith.constant 1.000000e+00 : f32
    %48 = vector.broadcast %cst_13 : f32 to vector<8x128xf32>
    %49 = arith.addf %48, %47 : vector<8x128xf32>
    %50 = arith.divf %48, %49 : vector<8x128xf32>
    %51 = math.tanh %45 : vector<8x128xf32>
    %52 = vector.extract_strided_slice %50 {offsets = [0, 0], sizes = [8, 32], strides = [1, 1]} : vector<8x128xf32> to vector<8x32xf32>
    %53 = vector.extract_strided_slice %50 {offsets = [0, 32], sizes = [8, 32], strides = [1, 1]} : vector<8x128xf32> to vector<8x32xf32>
    %54 = vector.extract_strided_slice %51 {offsets = [0, 64], sizes = [8, 32], strides = [1, 1]} : vector<8x128xf32> to vector<8x32xf32>
    %55 = vector.extract_strided_slice %50 {offsets = [0, 96], sizes = [8, 32], strides = [1, 1]} : vector<8x128xf32> to vector<8x32xf32>
    %56 = arith.mulf %53, %36 : vector<8x32xf32>
    %57 = arith.mulf %52, %54 : vector<8x32xf32>
    %58 = arith.addf %56, %57 : vector<8x32xf32>
    %59 = math.tanh %58 : vector<8x32xf32>
    %60 = arith.mulf %55, %59 : vector<8x32xf32>
    %61 = vector.extract_strided_slice %2 {offsets = [16, 0], sizes = [8, 128], strides = [1, 1]} : vector<64x128xf32> to vector<8x128xf32>
    %62 = tpu.concatenate %60, %60 in 1 : vector<8x32xf32>, vector<8x32xf32> -> vector<8x64xf32>
    %63 = arith.mulf %62, %14 : vector<8x64xf32>
    %64 = arith.truncf %63 : vector<8x64xf32> to vector<8x64xbf16>
    %65 = arith.addf %61, %3 : vector<8x128xf32>
    %cst_14 = arith.constant dense<0.000000e+00> : vector<8x128xf32>
    %66 = tpu.matmul %64, %4, %cst_14 {dimension_numbers = #tpu.dot_dimension_numbers<[1], [0], [0], [1], [0, 0, 1, 1], [], []>} : vector<8x64xbf16>, vector<64x128xbf16>, vector<8x128xf32> -> vector<8x128xf32>
    %67 = arith.addf %65, %66 : vector<8x128xf32>
    %68 = arith.negf %67 : vector<8x128xf32>
    %69 = math.exp %68 : vector<8x128xf32>
    %cst_15 = arith.constant 1.000000e+00 : f32
    %70 = vector.broadcast %cst_15 : f32 to vector<8x128xf32>
    %71 = arith.addf %70, %69 : vector<8x128xf32>
    %72 = arith.divf %70, %71 : vector<8x128xf32>
    %73 = math.tanh %67 : vector<8x128xf32>
    %74 = vector.extract_strided_slice %72 {offsets = [0, 0], sizes = [8, 32], strides = [1, 1]} : vector<8x128xf32> to vector<8x32xf32>
    %75 = vector.extract_strided_slice %72 {offsets = [0, 32], sizes = [8, 32], strides = [1, 1]} : vector<8x128xf32> to vector<8x32xf32>
    %76 = vector.extract_strided_slice %73 {offsets = [0, 64], sizes = [8, 32], strides = [1, 1]} : vector<8x128xf32> to vector<8x32xf32>
    %77 = vector.extract_strided_slice %72 {offsets = [0, 96], sizes = [8, 32], strides = [1, 1]} : vector<8x128xf32> to vector<8x32xf32>
    %78 = arith.mulf %75, %58 : vector<8x32xf32>
    %79 = arith.mulf %74, %76 : vector<8x32xf32>
    %80 = arith.addf %78, %79 : vector<8x32xf32>
    %81 = math.tanh %80 : vector<8x32xf32>
    %82 = arith.mulf %77, %81 : vector<8x32xf32>
    %83 = vector.extract_strided_slice %2 {offsets = [24, 0], sizes = [8, 128], strides = [1, 1]} : vector<64x128xf32> to vector<8x128xf32>
    %84 = tpu.concatenate %82, %82 in 1 : vector<8x32xf32>, vector<8x32xf32> -> vector<8x64xf32>
    %85 = arith.mulf %84, %14 : vector<8x64xf32>
    %86 = arith.truncf %85 : vector<8x64xf32> to vector<8x64xbf16>
    %87 = arith.addf %83, %3 : vector<8x128xf32>
    %cst_16 = arith.constant dense<0.000000e+00> : vector<8x128xf32>
    %88 = tpu.matmul %86, %4, %cst_16 {dimension_numbers = #tpu.dot_dimension_numbers<[1], [0], [0], [1], [0, 0, 1, 1], [], []>} : vector<8x64xbf16>, vector<64x128xbf16>, vector<8x128xf32> -> vector<8x128xf32>
    %89 = arith.addf %87, %88 : vector<8x128xf32>
    %90 = arith.negf %89 : vector<8x128xf32>
    %91 = math.exp %90 : vector<8x128xf32>
    %cst_17 = arith.constant 1.000000e+00 : f32
    %92 = vector.broadcast %cst_17 : f32 to vector<8x128xf32>
    %93 = arith.addf %92, %91 : vector<8x128xf32>
    %94 = arith.divf %92, %93 : vector<8x128xf32>
    %95 = math.tanh %89 : vector<8x128xf32>
    %96 = vector.extract_strided_slice %94 {offsets = [0, 0], sizes = [8, 32], strides = [1, 1]} : vector<8x128xf32> to vector<8x32xf32>
    %97 = vector.extract_strided_slice %94 {offsets = [0, 32], sizes = [8, 32], strides = [1, 1]} : vector<8x128xf32> to vector<8x32xf32>
    %98 = vector.extract_strided_slice %95 {offsets = [0, 64], sizes = [8, 32], strides = [1, 1]} : vector<8x128xf32> to vector<8x32xf32>
    %99 = vector.extract_strided_slice %94 {offsets = [0, 96], sizes = [8, 32], strides = [1, 1]} : vector<8x128xf32> to vector<8x32xf32>
    %100 = arith.mulf %97, %80 : vector<8x32xf32>
    %101 = arith.mulf %96, %98 : vector<8x32xf32>
    %102 = arith.addf %100, %101 : vector<8x32xf32>
    %103 = math.tanh %102 : vector<8x32xf32>
    %104 = arith.mulf %99, %103 : vector<8x32xf32>
    %105 = vector.extract_strided_slice %2 {offsets = [32, 0], sizes = [8, 128], strides = [1, 1]} : vector<64x128xf32> to vector<8x128xf32>
    %106 = tpu.concatenate %104, %104 in 1 : vector<8x32xf32>, vector<8x32xf32> -> vector<8x64xf32>
    %107 = arith.mulf %106, %14 : vector<8x64xf32>
    %108 = arith.truncf %107 : vector<8x64xf32> to vector<8x64xbf16>
    %109 = arith.addf %105, %3 : vector<8x128xf32>
    %cst_18 = arith.constant dense<0.000000e+00> : vector<8x128xf32>
    %110 = tpu.matmul %108, %4, %cst_18 {dimension_numbers = #tpu.dot_dimension_numbers<[1], [0], [0], [1], [0, 0, 1, 1], [], []>} : vector<8x64xbf16>, vector<64x128xbf16>, vector<8x128xf32> -> vector<8x128xf32>
    %111 = arith.addf %109, %110 : vector<8x128xf32>
    %112 = arith.negf %111 : vector<8x128xf32>
    %113 = math.exp %112 : vector<8x128xf32>
    %cst_19 = arith.constant 1.000000e+00 : f32
    %114 = vector.broadcast %cst_19 : f32 to vector<8x128xf32>
    %115 = arith.addf %114, %113 : vector<8x128xf32>
    %116 = arith.divf %114, %115 : vector<8x128xf32>
    %117 = math.tanh %111 : vector<8x128xf32>
    %118 = vector.extract_strided_slice %116 {offsets = [0, 0], sizes = [8, 32], strides = [1, 1]} : vector<8x128xf32> to vector<8x32xf32>
    %119 = vector.extract_strided_slice %116 {offsets = [0, 32], sizes = [8, 32], strides = [1, 1]} : vector<8x128xf32> to vector<8x32xf32>
    %120 = vector.extract_strided_slice %117 {offsets = [0, 64], sizes = [8, 32], strides = [1, 1]} : vector<8x128xf32> to vector<8x32xf32>
    %121 = vector.extract_strided_slice %116 {offsets = [0, 96], sizes = [8, 32], strides = [1, 1]} : vector<8x128xf32> to vector<8x32xf32>
    %122 = arith.mulf %119, %102 : vector<8x32xf32>
    %123 = arith.mulf %118, %120 : vector<8x32xf32>
    %124 = arith.addf %122, %123 : vector<8x32xf32>
    %125 = math.tanh %124 : vector<8x32xf32>
    %126 = arith.mulf %121, %125 : vector<8x32xf32>
    %127 = vector.extract_strided_slice %2 {offsets = [40, 0], sizes = [8, 128], strides = [1, 1]} : vector<64x128xf32> to vector<8x128xf32>
    %128 = tpu.concatenate %126, %126 in 1 : vector<8x32xf32>, vector<8x32xf32> -> vector<8x64xf32>
    %129 = arith.mulf %128, %14 : vector<8x64xf32>
    %130 = arith.truncf %129 : vector<8x64xf32> to vector<8x64xbf16>
    %131 = arith.addf %127, %3 : vector<8x128xf32>
    %cst_20 = arith.constant dense<0.000000e+00> : vector<8x128xf32>
    %132 = tpu.matmul %130, %4, %cst_20 {dimension_numbers = #tpu.dot_dimension_numbers<[1], [0], [0], [1], [0, 0, 1, 1], [], []>} : vector<8x64xbf16>, vector<64x128xbf16>, vector<8x128xf32> -> vector<8x128xf32>
    %133 = arith.addf %131, %132 : vector<8x128xf32>
    %134 = arith.negf %133 : vector<8x128xf32>
    %135 = math.exp %134 : vector<8x128xf32>
    %cst_21 = arith.constant 1.000000e+00 : f32
    %136 = vector.broadcast %cst_21 : f32 to vector<8x128xf32>
    %137 = arith.addf %136, %135 : vector<8x128xf32>
    %138 = arith.divf %136, %137 : vector<8x128xf32>
    %139 = math.tanh %133 : vector<8x128xf32>
    %140 = vector.extract_strided_slice %138 {offsets = [0, 0], sizes = [8, 32], strides = [1, 1]} : vector<8x128xf32> to vector<8x32xf32>
    %141 = vector.extract_strided_slice %138 {offsets = [0, 32], sizes = [8, 32], strides = [1, 1]} : vector<8x128xf32> to vector<8x32xf32>
    %142 = vector.extract_strided_slice %139 {offsets = [0, 64], sizes = [8, 32], strides = [1, 1]} : vector<8x128xf32> to vector<8x32xf32>
    %143 = vector.extract_strided_slice %138 {offsets = [0, 96], sizes = [8, 32], strides = [1, 1]} : vector<8x128xf32> to vector<8x32xf32>
    %144 = arith.mulf %141, %124 : vector<8x32xf32>
    %145 = arith.mulf %140, %142 : vector<8x32xf32>
    %146 = arith.addf %144, %145 : vector<8x32xf32>
    %147 = math.tanh %146 : vector<8x32xf32>
    %148 = arith.mulf %143, %147 : vector<8x32xf32>
    %149 = vector.extract_strided_slice %2 {offsets = [48, 0], sizes = [8, 128], strides = [1, 1]} : vector<64x128xf32> to vector<8x128xf32>
    %150 = tpu.concatenate %148, %148 in 1 : vector<8x32xf32>, vector<8x32xf32> -> vector<8x64xf32>
    %151 = arith.mulf %150, %14 : vector<8x64xf32>
    %152 = arith.truncf %151 : vector<8x64xf32> to vector<8x64xbf16>
    %153 = arith.addf %149, %3 : vector<8x128xf32>
    %cst_22 = arith.constant dense<0.000000e+00> : vector<8x128xf32>
    %154 = tpu.matmul %152, %4, %cst_22 {dimension_numbers = #tpu.dot_dimension_numbers<[1], [0], [0], [1], [0, 0, 1, 1], [], []>} : vector<8x64xbf16>, vector<64x128xbf16>, vector<8x128xf32> -> vector<8x128xf32>
    %155 = arith.addf %153, %154 : vector<8x128xf32>
    %156 = arith.negf %155 : vector<8x128xf32>
    %157 = math.exp %156 : vector<8x128xf32>
    %cst_23 = arith.constant 1.000000e+00 : f32
    %158 = vector.broadcast %cst_23 : f32 to vector<8x128xf32>
    %159 = arith.addf %158, %157 : vector<8x128xf32>
    %160 = arith.divf %158, %159 : vector<8x128xf32>
    %161 = math.tanh %155 : vector<8x128xf32>
    %162 = vector.extract_strided_slice %160 {offsets = [0, 0], sizes = [8, 32], strides = [1, 1]} : vector<8x128xf32> to vector<8x32xf32>
    %163 = vector.extract_strided_slice %160 {offsets = [0, 32], sizes = [8, 32], strides = [1, 1]} : vector<8x128xf32> to vector<8x32xf32>
    %164 = vector.extract_strided_slice %161 {offsets = [0, 64], sizes = [8, 32], strides = [1, 1]} : vector<8x128xf32> to vector<8x32xf32>
    %165 = vector.extract_strided_slice %160 {offsets = [0, 96], sizes = [8, 32], strides = [1, 1]} : vector<8x128xf32> to vector<8x32xf32>
    %166 = arith.mulf %163, %146 : vector<8x32xf32>
    %167 = arith.mulf %162, %164 : vector<8x32xf32>
    %168 = arith.addf %166, %167 : vector<8x32xf32>
    %169 = math.tanh %168 : vector<8x32xf32>
    %170 = arith.mulf %165, %169 : vector<8x32xf32>
    %171 = vector.extract_strided_slice %2 {offsets = [56, 0], sizes = [8, 128], strides = [1, 1]} : vector<64x128xf32> to vector<8x128xf32>
    %172 = tpu.concatenate %170, %170 in 1 : vector<8x32xf32>, vector<8x32xf32> -> vector<8x64xf32>
    %173 = arith.mulf %172, %14 : vector<8x64xf32>
    %174 = arith.truncf %173 : vector<8x64xf32> to vector<8x64xbf16>
    %175 = arith.addf %171, %3 : vector<8x128xf32>
    %cst_24 = arith.constant dense<0.000000e+00> : vector<8x128xf32>
    %176 = tpu.matmul %174, %4, %cst_24 {dimension_numbers = #tpu.dot_dimension_numbers<[1], [0], [0], [1], [0, 0, 1, 1], [], []>} : vector<8x64xbf16>, vector<64x128xbf16>, vector<8x128xf32> -> vector<8x128xf32>
    %177 = arith.addf %175, %176 : vector<8x128xf32>
    %178 = arith.negf %177 : vector<8x128xf32>
    %179 = math.exp %178 : vector<8x128xf32>
    %cst_25 = arith.constant 1.000000e+00 : f32
    %180 = vector.broadcast %cst_25 : f32 to vector<8x128xf32>
    %181 = arith.addf %180, %179 : vector<8x128xf32>
    %182 = arith.divf %180, %181 : vector<8x128xf32>
    %183 = math.tanh %177 : vector<8x128xf32>
    %184 = vector.extract_strided_slice %182 {offsets = [0, 0], sizes = [8, 32], strides = [1, 1]} : vector<8x128xf32> to vector<8x32xf32>
    %185 = vector.extract_strided_slice %182 {offsets = [0, 32], sizes = [8, 32], strides = [1, 1]} : vector<8x128xf32> to vector<8x32xf32>
    %186 = vector.extract_strided_slice %183 {offsets = [0, 64], sizes = [8, 32], strides = [1, 1]} : vector<8x128xf32> to vector<8x32xf32>
    %187 = vector.extract_strided_slice %182 {offsets = [0, 96], sizes = [8, 32], strides = [1, 1]} : vector<8x128xf32> to vector<8x32xf32>
    %188 = arith.mulf %185, %168 : vector<8x32xf32>
    %189 = arith.mulf %184, %186 : vector<8x32xf32>
    %190 = arith.addf %188, %189 : vector<8x32xf32>
    %191 = math.tanh %190 : vector<8x32xf32>
    %192 = arith.mulf %187, %191 : vector<8x32xf32>
    %193 = vector.extract_strided_slice %192 {offsets = [0, 0], sizes = [2, 32], strides = [1, 1]} : vector<8x32xf32> to vector<2x32xf32>
    %194 = vector.extract_strided_slice %192 {offsets = [2, 0], sizes = [2, 32], strides = [1, 1]} : vector<8x32xf32> to vector<2x32xf32>
    %195 = vector.extract_strided_slice %192 {offsets = [4, 0], sizes = [2, 32], strides = [1, 1]} : vector<8x32xf32> to vector<2x32xf32>
    %196 = vector.extract_strided_slice %192 {offsets = [6, 0], sizes = [2, 32], strides = [1, 1]} : vector<8x32xf32> to vector<2x32xf32>
    %197 = arith.mulf %193, %194 : vector<2x32xf32>
    %198 = arith.mulf %195, %196 : vector<2x32xf32>
    %199 = arith.subf %193, %194 : vector<2x32xf32>
    %200 = math.absf %199 : vector<2x32xf32>
    %201 = arith.subf %195, %196 : vector<2x32xf32>
    %202 = math.absf %201 : vector<2x32xf32>
    %c0_26 = arith.constant 0 : index
    %c0_27 = arith.constant 0 : index
    %203 = vector.load %arg5[%c0_26, %c0_27] : memref<1x32xf32, #tpu.memory_space<vmem>>, vector<1x32xf32>
    %204 = arith.truncf %193 : vector<2x32xf32> to vector<2x32xbf16>
    %c0_28 = arith.constant 0 : index
    %c0_29 = arith.constant 0 : index
    %c0_30 = arith.constant 0 : index
    %205 = vector.load %arg4[%c0_28, %c0_29, %c0_30] : memref<8x32x32xbf16, #tpu.memory_space<vmem>>, vector<1x32x32xbf16>
    %206 = vector.shape_cast %205 : vector<1x32x32xbf16> to vector<32x32xbf16>
    %cst_31 = arith.constant dense<0.000000e+00> : vector<2x32xf32>
    %207 = tpu.matmul %204, %206, %cst_31 {dimension_numbers = #tpu.dot_dimension_numbers<[1], [0], [0], [1], [0, 0, 1, 1], [], []>} : vector<2x32xbf16>, vector<32x32xbf16>, vector<2x32xf32> -> vector<2x32xf32>
    %208 = vector.broadcast %203 : vector<1x32xf32> to vector<2x32xf32>
    %209 = arith.addf %208, %207 : vector<2x32xf32>
    %210 = arith.truncf %195 : vector<2x32xf32> to vector<2x32xbf16>
    %c1 = arith.constant 1 : index
    %c0_32 = arith.constant 0 : index
    %c0_33 = arith.constant 0 : index
    %211 = vector.load %arg4[%c1, %c0_32, %c0_33] : memref<8x32x32xbf16, #tpu.memory_space<vmem>>, vector<1x32x32xbf16>
    %212 = vector.shape_cast %211 : vector<1x32x32xbf16> to vector<32x32xbf16>
    %cst_34 = arith.constant dense<0.000000e+00> : vector<2x32xf32>
    %213 = tpu.matmul %210, %212, %cst_34 {dimension_numbers = #tpu.dot_dimension_numbers<[1], [0], [0], [1], [0, 0, 1, 1], [], []>} : vector<2x32xbf16>, vector<32x32xbf16>, vector<2x32xf32> -> vector<2x32xf32>
    %214 = arith.addf %209, %213 : vector<2x32xf32>
    %215 = arith.truncf %194 : vector<2x32xf32> to vector<2x32xbf16>
    %c2 = arith.constant 2 : index
    %c0_35 = arith.constant 0 : index
    %c0_36 = arith.constant 0 : index
    %216 = vector.load %arg4[%c2, %c0_35, %c0_36] : memref<8x32x32xbf16, #tpu.memory_space<vmem>>, vector<1x32x32xbf16>
    %217 = vector.shape_cast %216 : vector<1x32x32xbf16> to vector<32x32xbf16>
    %cst_37 = arith.constant dense<0.000000e+00> : vector<2x32xf32>
    %218 = tpu.matmul %215, %217, %cst_37 {dimension_numbers = #tpu.dot_dimension_numbers<[1], [0], [0], [1], [0, 0, 1, 1], [], []>} : vector<2x32xbf16>, vector<32x32xbf16>, vector<2x32xf32> -> vector<2x32xf32>
    %219 = arith.addf %214, %218 : vector<2x32xf32>
    %220 = arith.truncf %196 : vector<2x32xf32> to vector<2x32xbf16>
    %c3 = arith.constant 3 : index
    %c0_38 = arith.constant 0 : index
    %c0_39 = arith.constant 0 : index
    %221 = vector.load %arg4[%c3, %c0_38, %c0_39] : memref<8x32x32xbf16, #tpu.memory_space<vmem>>, vector<1x32x32xbf16>
    %222 = vector.shape_cast %221 : vector<1x32x32xbf16> to vector<32x32xbf16>
    %cst_40 = arith.constant dense<0.000000e+00> : vector<2x32xf32>
    %223 = tpu.matmul %220, %222, %cst_40 {dimension_numbers = #tpu.dot_dimension_numbers<[1], [0], [0], [1], [0, 0, 1, 1], [], []>} : vector<2x32xbf16>, vector<32x32xbf16>, vector<2x32xf32> -> vector<2x32xf32>
    %224 = arith.addf %219, %223 : vector<2x32xf32>
    %225 = arith.truncf %197 : vector<2x32xf32> to vector<2x32xbf16>
    %c4 = arith.constant 4 : index
    %c0_41 = arith.constant 0 : index
    %c0_42 = arith.constant 0 : index
    %226 = vector.load %arg4[%c4, %c0_41, %c0_42] : memref<8x32x32xbf16, #tpu.memory_space<vmem>>, vector<1x32x32xbf16>
    %227 = vector.shape_cast %226 : vector<1x32x32xbf16> to vector<32x32xbf16>
    %cst_43 = arith.constant dense<0.000000e+00> : vector<2x32xf32>
    %228 = tpu.matmul %225, %227, %cst_43 {dimension_numbers = #tpu.dot_dimension_numbers<[1], [0], [0], [1], [0, 0, 1, 1], [], []>} : vector<2x32xbf16>, vector<32x32xbf16>, vector<2x32xf32> -> vector<2x32xf32>
    %229 = arith.addf %224, %228 : vector<2x32xf32>
    %230 = arith.truncf %198 : vector<2x32xf32> to vector<2x32xbf16>
    %c5 = arith.constant 5 : index
    %c0_44 = arith.constant 0 : index
    %c0_45 = arith.constant 0 : index
    %231 = vector.load %arg4[%c5, %c0_44, %c0_45] : memref<8x32x32xbf16, #tpu.memory_space<vmem>>, vector<1x32x32xbf16>
    %232 = vector.shape_cast %231 : vector<1x32x32xbf16> to vector<32x32xbf16>
    %cst_46 = arith.constant dense<0.000000e+00> : vector<2x32xf32>
    %233 = tpu.matmul %230, %232, %cst_46 {dimension_numbers = #tpu.dot_dimension_numbers<[1], [0], [0], [1], [0, 0, 1, 1], [], []>} : vector<2x32xbf16>, vector<32x32xbf16>, vector<2x32xf32> -> vector<2x32xf32>
    %234 = arith.addf %229, %233 : vector<2x32xf32>
    %235 = arith.truncf %200 : vector<2x32xf32> to vector<2x32xbf16>
    %c6 = arith.constant 6 : index
    %c0_47 = arith.constant 0 : index
    %c0_48 = arith.constant 0 : index
    %236 = vector.load %arg4[%c6, %c0_47, %c0_48] : memref<8x32x32xbf16, #tpu.memory_space<vmem>>, vector<1x32x32xbf16>
    %237 = vector.shape_cast %236 : vector<1x32x32xbf16> to vector<32x32xbf16>
    %cst_49 = arith.constant dense<0.000000e+00> : vector<2x32xf32>
    %238 = tpu.matmul %235, %237, %cst_49 {dimension_numbers = #tpu.dot_dimension_numbers<[1], [0], [0], [1], [0, 0, 1, 1], [], []>} : vector<2x32xbf16>, vector<32x32xbf16>, vector<2x32xf32> -> vector<2x32xf32>
    %239 = arith.addf %234, %238 : vector<2x32xf32>
    %240 = arith.truncf %202 : vector<2x32xf32> to vector<2x32xbf16>
    %c7 = arith.constant 7 : index
    %c0_50 = arith.constant 0 : index
    %c0_51 = arith.constant 0 : index
    %241 = vector.load %arg4[%c7, %c0_50, %c0_51] : memref<8x32x32xbf16, #tpu.memory_space<vmem>>, vector<1x32x32xbf16>
    %242 = vector.shape_cast %241 : vector<1x32x32xbf16> to vector<32x32xbf16>
    %cst_52 = arith.constant dense<0.000000e+00> : vector<2x32xf32>
    %243 = tpu.matmul %240, %242, %cst_52 {dimension_numbers = #tpu.dot_dimension_numbers<[1], [0], [0], [1], [0, 0, 1, 1], [], []>} : vector<2x32xbf16>, vector<32x32xbf16>, vector<2x32xf32> -> vector<2x32xf32>
    %244 = arith.addf %239, %243 : vector<2x32xf32>
    %cst_53 = arith.constant 0.000000e+00 : f32
    %245 = vector.broadcast %cst_53 : f32 to vector<2x32xf32>
    %246 = arith.maximumf %244, %245 : vector<2x32xf32>
    %247 = arith.truncf %246 : vector<2x32xf32> to vector<2x32xbf16>
    %c0_54 = arith.constant 0 : index
    %c0_55 = arith.constant 0 : index
    %248 = vector.load %arg6[%c0_54, %c0_55] : memref<32x128xbf16, #tpu.memory_space<vmem>>, vector<32x128xbf16>
    %cst_56 = arith.constant dense<0.000000e+00> : vector<2x128xf32>
    %249 = tpu.matmul %247, %248, %cst_56 {dimension_numbers = #tpu.dot_dimension_numbers<[1], [0], [0], [1], [0, 0, 1, 1], [], []>} : vector<2x32xbf16>, vector<32x128xbf16>, vector<2x128xf32> -> vector<2x128xf32>
    %c0_57 = arith.constant 0 : index
    %c0_58 = arith.constant 0 : index
    %250 = vector.load %arg7[%c0_57, %c0_58] : memref<1x128xf32, #tpu.memory_space<vmem>>, vector<1x128xf32>
    %251 = vector.broadcast %250 : vector<1x128xf32> to vector<2x128xf32>
    %252 = arith.addf %249, %251 : vector<2x128xf32>
    %cst_59 = arith.constant dense<0xFF800000> : vector<2xf32>
    %253 = vector.multi_reduction <maximumf>, %252, %cst_59 [1] : vector<2x128xf32> to vector<2xf32>
    %254 = vector.shape_cast %253 : vector<2xf32> to vector<2x1xf32>
    %255 = vector.broadcast %254 : vector<2x1xf32> to vector<2x128xf32>
    %256 = arith.subf %252, %255 : vector<2x128xf32>
    %257 = math.exp %256 : vector<2x128xf32>
    %cst_60 = arith.constant dense<0.000000e+00> : vector<2xf32>
    %258 = vector.multi_reduction <add>, %257, %cst_60 [1] : vector<2x128xf32> to vector<2xf32>
    %259 = vector.shape_cast %258 : vector<2xf32> to vector<2x1xf32>
    %260 = vector.broadcast %259 : vector<2x1xf32> to vector<2x128xf32>
    %261 = arith.divf %257, %260 : vector<2x128xf32>
    %c0_61 = arith.constant 0 : index
    %c0_62 = arith.constant 0 : index
    %262 = vector.load %arg8[%c0_61, %c0_62] : memref<2x128xf32, #tpu.memory_space<vmem>>, vector<2x128xf32>
    tpu.vector_store %arg8[%c0_61, %c0_62], %261 {strides = array<i32>} : memref<2x128xf32, #tpu.memory_space<vmem>>, vector<2x128xf32>,
    return
  }
}

</mosaic_0001>

<bundles_post_ra>
// kernel: bilstm_nli_forward.1
= control target key start
LH: loop header
LB: loop body
LE: loop exit
PB: predicated region body
PF: predicated region fallthrough
CT: control target
= control target key end

     0   :  { %v178_v2 = vlaneseq  ;;  %v1965_v3 = vmov 0.0   ;;  %vm91_vm0 = vcmask 523264   ;;  %vm1966_vm1 = vmmov 0   ;;  %s2354_s0 = inlined_call_operand.vmem [shape: bf16[64,64], index: 0, kind: input, shape index: {}]   ;;  %s2355_s1 = inlined_call_operand.vmem [shape: bf16[64,128], index: 1, kind: input, shape index: {}]   ;;  %s2356_s2 = inlined_call_operand.vmem [shape: f32[8,128], index: 2, kind: input, shape index: {}]   ;;  %s2357_s3 = inlined_call_operand.vmem [shape: bf16[64,128], index: 3, kind: input, shape index: {}]   ;;  %s2358_s4 = inlined_call_operand.vmem [shape: bf16[8,32,32], index: 4, kind: input, shape index: {}]   ;;  %s2359_s5 = inlined_call_operand.vmem [shape: f32[1,32], index: 5, kind: input, shape index: {}]   ;;  %s2360_s6 = inlined_call_operand.vmem [shape: bf16[32,128], index: 6, kind: input, shape index: {}]   ;;  %s2361_s7 = inlined_call_operand.vmem [shape: f32[1,128], index: 7, kind: input, shape index: {}]   ;;  %s2362_s8 = inlined_call_operand.hbm [shape: f32[2,128], index: 8, kind: output, shape index: {}]  }
   0x1   :  { %v1843_v0 = vld [vmem:[%s2355_s1] sm:$0xff]   ;;  %v1844_v1 = vld [vmem:[%s2355_s1 + $0x8] sm:$0xff]   ;;  %1664 = vmatprep.subr.bf16.mxu1 %v1965_v3  ;;  %v1845_v4 = vld [vmem:[%s2355_s1 + $0x10] sm:$0xff]   ;;  %1672 = vmatprep.mubr.msk.bf16.mxu1 %vm1966_vm1, %v1965_v3  ;;  %vm1967_vm5 = vmmov 1  }
   0x2   :  { %1624 = vmatprep.subr.bf16.mxu0 %v1843_v0  ;;  %v1847_v5 = vld [vmem:[%s2354_s0] sm:$0xff]   ;;  %v179_v6 = vshrl.u32 %v178_v2, 7  ;;  %v181_v7 = vand.u32 127, %v178_v2  ;;  %v1846_v9 = vld [vmem:[%s2355_s1 + $0x18] sm:$0xff]   ;;  %v2045_v10 = vld [vmem:[%s2357_s3 + $0x8] sm:$0xff]  }
   0x3   :  { %1625 = vmatpush3.bf16.msra.mxu0 %v1843_v0  ;;  %1632 = vmatprep.mubr.msk.bf16.mxu0 %vm91_vm0, %v1847_v5  ;;  %v2035_v8 = vld [vmem:[%s2357_s3] sm:$0xff]   ;;  %v1848_v11 = vld [vmem:[%s2354_s0 + $0x8] sm:$0xff]   ;;  %v2055_v12 = vld [vmem:[%s2357_s3 + $0x10] sm:$0xff]  }
   0x4   :  { %1626 = vmatprep.subr.bf16.mxu0 %v1844_v1  ;;  %1665 = vmatpush3.bf16.msra.mxu1 %v2035_v8  ;;  %vm182_vm2 = vcmp.lt.s32.totalorder %v179_v6, 4  ;;  %vm183_vm3 = vcmp.lt.s32.totalorder %v181_v7, 32  ;;  %v1851_v13 = vld [vmem:[%s2354_s0 + $0x10] sm:$0xff]   ;;  %v2067_v15 = vld [vmem:[%s2357_s3 + $0x18] sm:$0xff]  }
   0x5   :  { %1666 = vmatprep.subr.bf16.mxu1 %v1965_v3  ;;  %vm184_vm4 = vmxor %vm182_vm2, %vm183_vm3  ;;  %v1852_v16 = vld [vmem:[%s2354_s0 + $0x18] sm:$0xff]  }
   0x6   :  { %vm185_vm6 = vmxor %vm184_vm4, %vm1967_vm5 }
   0x7   :  { %1627 = vmatpush3.bf16.msra.mxu0 %v1844_v1  ;;  %v2061_v14 = vsel %vm185_vm6, 1.0, %v1965_v3 }
   0x8   :  { %1628 = vmatprep.subr.bf16.mxu0 %v1845_v4  ;;  %1667 = vmatpush3.bf16.msra.mxu1 %v2045_v10 }
   0x9   :  { %1668 = vmatprep.subr.bf16.mxu1 %v1965_v3 }
   0xb   :  { %1629 = vmatpush3.bf16.msra.mxu0 %v1845_v4 }
   0xc   :  { %1630 = vmatprep.subr.bf16.mxu0 %v1846_v9  ;;  %1669 = vmatpush3.bf16.msra.mxu1 %v2055_v12 }
   0xd   :  { %1670 = vmatprep.subr.bf16.mxu1 %v1965_v3 }
   0xf   :  { %1631 = vmatpush3.bf16.msra.mxu0 %v1846_v9 }
  0x10   :  { %1640 = vmatprep.subr.bf16.mxu0 %v1965_v3  ;;  %1671 = vmatpush3.bf16.msra.mxu1 %v2067_v15 }
  0x11   :  { %1688 = vmatprep.subr.bf16.mxu1 %v1965_v3 }
  0x12   :  { %1633 = vmatmul.mubr.msk.bf16.vlgmr.msra.gmra.mrb[0].mxu0 %vm91_vm0, %v1848_v11 }
  0x13   :  { %1641 = vmatpush3.bf16.msra.mxu0 %v2035_v8  ;;  %1636 = vmatprep.mubr.msk.bf16.mxu0 %vm91_vm0, %v1851_v13 }
  0x14   :  { %1642 = vmatprep.subr.bf16.mxu0 %v1965_v3 }
  0x17   :  { %1643 = vmatpush3.bf16.msra.mxu0 %v2045_v10 }
  0x18   :  { %1644 = vmatprep.subr.bf16.mxu0 %v1965_v3 }
  0x19   :  { %13 = vsyncpa [#allocation3], 0  ;;  %v188_v17 = vmul.f32 0.0, %v2061_v14  ;;  %v169_v19 = vld [vmem:[%s2356_s2] sm:$0xff]  ;;  %s1968_s2 = smov 64   ;;  %s1969_s28 = smov 32  }
  0x1a   :  { %1637 = vmatmul.mubr.msk.bf16.gmra.mrb[4].mxu0 %vm91_vm0, %v1852_v16  ;;  %vm290_vm7 = vcmask 261120   ;;  %vm1432_vm8 = vcmask 1041408  }
  0x1b   :  { %1645 = vmatpush3.bf16.msra.mxu0 %v2055_v12  ;;  %1648 = vmatprep.mubr.msk.bf16.mxu0 %vm1966_vm1, %v1965_v3  ;;  %v189_v18 = vpack.c.bf16 %v188_v17, %v188_v17 }
  0x1c   :  { %1646 = vmatprep.subr.bf16.mxu0 %v1965_v3 }
  0x1f   :  { %1647 = vmatpush3.bf16.msra.mxu0 %v2067_v15 }
  0x20   :  { %1652 = vmatprep.subr.bf16.mxu0 %v1965_v3 }
  0x22   :  { %1649 = vmatmul.mubr.msk.bf16.vlgmr.msra.gmra.mrb[8].mxu0 %vm91_vm0, %v189_v18 }
  0x23   :  { %1653 = vmatpush3.bf16.msra.mxu0 %v2035_v8  ;;  %1660 = vmatprep.mubr.msk.bf16.mxu0 %vm1966_vm1, %v1965_v3 }
  0x24   :  { %1654 = vmatprep.subr.bf16.mxu0 %v1965_v3 }
  0x27   :  { %1655 = vmatpush3.bf16.msra.mxu0 %v2045_v10 }
  0x28   :  { %1656 = vmatprep.subr.bf16.mxu0 %v1965_v3 }
  0x2b   :  { %1657 = vmatpush3.bf16.msra.mxu0 %v2055_v12 }
  0x2c   :  { %1658 = vmatprep.subr.bf16.mxu0 %v1965_v3 }
  0x2f   :  { %1659 = vmatpush3.bf16.msra.mxu0 %v2067_v15 }
  0x30   :  { %1676 = vmatprep.subr.bf16.mxu0 %v1965_v3 }
  0xe5   :  { %v1634_v20 = vpop.f32.mrb[0].mxu0 }
  0xe6   :  { %v2104_v21 = vadd.f32 %v1634_v20, %v169_v19  ;;  %v138_v22 = vpop.f32.mrb[1].mxu0 }
  0xe7   :  { %v1635_v23 = vpop.f32.mrb[2].mxu0  ;;  %v190_v35 = vadd.f32 %v169_v19, %v138_v22 }
  0xe8   :  { %v2106_v24 = vadd.f32 %v1635_v23, %v169_v19  ;;  %v141_v25 = vpop.f32.mrb[3].mxu0 }
  0xe9   :  { %v294_v26 = vadd.f32 %v169_v19, %v141_v25 }
  0xed   :  { %v1638_v27 = vpop.f32.mrb[4].mxu0 }
  0xee   :  { %v2108_v28 = vadd.f32 %v1638_v27, %v169_v19  ;;  %v154_v29 = vpop.f32.mrb[5].mxu0 }
  0xef   :  { %v2110_v30 = vadd.f32 %v169_v19, %v154_v29  ;;  %v1639_v31 = vpop.f32.mrb[6].mxu0 }
  0xf0   :  { %v2112_v32 = vadd.f32 %v1639_v31, %v169_v19  ;;  %v157_v33 = vpop.f32.mrb[7].mxu0 }
  0xf1   :  { %v2114_v34 = vadd.f32 %v169_v19, %v157_v33 }
  0xf5   :  { %v252_v36 = vpop.f32.mrb[8].mxu0 }
  0xf6   :  { %v258_v37 = vadd.f32 %v252_v36, %v190_v35  ;;  %v1650_v38 = vpop.f32.mrb[9].mxu0 }
  0xf7   :  { %v255_v39 = vpop.f32.mrb[10].mxu0 }
  0xf8   :  { %1873 = vtanh.f32 %v258_v37  ;;  %v1651_v40 = vpop.f32.mrb[11].mxu0  ;;  %v1477_v42 = vmul.f32 -1.442695, %v258_v37 }
  0xfa   :  { %1875 = vpow2.f32 %v1477_v42 }
 0x102   :  { %v1874_v41 = vpop.eup %1873 }
 0x103   :  { %268 = vrot.lane.b32.xlu0 %v1874_v41, %s1968_s2 }
 0x104   :  { %v1876_v43 = vpop.eup %1875 }
 0x105   :  { %v262_v44 = vadd.f32 1.0, %v1876_v43 }
 0x107   :  { %1877 = vrcp.f32 %v262_v44 }
 0x111   :  { %v1878_v45 = vpop.eup %1877 }
 0x112   :  { %v266_v48 = vmul.f32 0.0, %v1878_v45 }
 0x175   :  { %v269_v46 = vpop.permute.xlu0 %268 }
 0x176   :  { %v271_v47 = vmul.f32 %v1878_v45, %v269_v46 }
 0x178   :  { %273 = vrot.lane.b32.xlu0 %v271_v47, %s1969_s28 }
 0x1ea   :  { %v274_v49 = vpop.permute.xlu0 %273 }
 0x1eb   :  { %v276_v50 = vadd.f32 %v274_v49, %v266_v48 }
 0x1ed   :  { %1879 = vtanh.f32 %v276_v50 }
 0x1f7   :  { %v1880_v51 = vpop.eup %1879 }
 0x1f8   :  { %279 = vrot.lane.b32.xlu1 %v1880_v51, %s1968_s2 }
 0x26a   :  { %v280_v52 = vpop.permute.xlu1 %279 }
 0x26b   :  { %v282_v53 = vmul.f32 %v1878_v45, %v280_v52 }
 0x26d   :  { %287 = vrot.lane.b32.xlu0 %v282_v53, %s1968_s2  ;;  %284 = vrot.lane.b32.xlu1 %v282_v53, %s1969_s28 }
 0x2df   :  { %v288_v54 = vpop.permute.xlu0 %287  ;;  %v285_v55 = vpop.permute.xlu1 %284 }
 0x2e0   :  { %v291_v56 = vsel %vm290_vm7, %v285_v55, %v288_v54 }
 0x2e1   :  { %v292_v57 = vmul.f32 %v2061_v14, %v291_v56 }
 0x2e3   :  { %v293_v58 = vpack.c.bf16 %v292_v57, %v292_v57 }
 0x2e5   :  { %1661 = vmatmul.mubr.msk.bf16.vlgmr.msra.gmra.mrb[12].mxu0 %vm91_vm0, %v293_v58 }
 0x2e6   :  { %1677 = vmatpush3.bf16.msra.mxu0 %v2035_v8  ;;  %1684 = vmatprep.mubr.msk.bf16.mxu0 %vm1966_vm1, %v1965_v3 }
 0x2e7   :  { %1678 = vmatprep.subr.bf16.mxu0 %v1965_v3 }
 0x2ea   :  { %1679 = vmatpush3.bf16.msra.mxu0 %v2045_v10 }
 0x2eb   :  { %1680 = vmatprep.subr.bf16.mxu0 %v1965_v3 }
 0x2ee   :  { %1681 = vmatpush3.bf16.msra.mxu0 %v2055_v12 }
 0x2ef   :  { %1682 = vmatprep.subr.bf16.mxu0 %v1965_v3 }
 0x2f2   :  { %1683 = vmatpush3.bf16.msra.mxu0 %v2067_v15 }
 0x2f3   :  { %1700 = vmatprep.subr.bf16.mxu0 %v1965_v3 }
 0x3b8   :  { %v332_v59 = vpop.f32.mrb[12].mxu0 }
 0x3b9   :  { %v338_v60 = vadd.f32 %v332_v59, %v294_v26  ;;  %v1662_v61 = vpop.f32.mrb[13].mxu0 }
 0x3ba   :  { %v335_v62 = vpop.f32.mrb[14].mxu0 }
 0x3bb   :  { %1881 = vtanh.f32 %v338_v60  ;;  %v1663_v63 = vpop.f32.mrb[15].mxu0  ;;  %v1479_v1 = vmul.f32 -1.442695, %v338_v60 }
 0x3bd   :  { %1883 = vpow2.f32 %v1479_v1 }
 0x3c5   :  { %v1882_v0 = vpop.eup %1881 }
 0x3c6   :  { %348 = vrot.lane.b32.xlu1 %v1882_v0, %s1968_s2 }
 0x3c7   :  { %v1884_v2 = vpop.eup %1883 }
 0x3c8   :  { %v342_v4 = vadd.f32 1.0, %v1884_v2 }
 0x3ca   :  { %1885 = vrcp.f32 %v342_v4 }
 0x3d4   :  { %v1886_v5 = vpop.eup %1885 }
 0x3d5   :  { %v346_v9 = vmul.f32 %v1886_v5, %v276_v50 }
 0x438   :  { %v349_v6 = vpop.permute.xlu1 %348 }
 0x439   :  { %v351_v7 = vmul.f32 %v1886_v5, %v349_v6 }
 0x43b   :  { %353 = vrot.lane.b32.xlu0 %v351_v7, %s1969_s28 }
 0x4ad   :  { %v354_v11 = vpop.permute.xlu0 %353 }
 0x4ae   :  { %v356_v13 = vadd.f32 %v354_v11, %v346_v9 }
 0x4b0   :  { %1887 = vtanh.f32 %v356_v13 }
 0x4ba   :  { %v1888_v16 = vpop.eup %1887 }
 0x4bb   :  { %359 = vrot.lane.b32.xlu1 %v1888_v16, %s1968_s2 }
 0x52d   :  { %v360_v17 = vpop.permute.xlu1 %359 }
 0x52e   :  { %v362_v18 = vmul.f32 %v1886_v5, %v360_v17 }
 0x530   :  { %367 = vrot.lane.b32.xlu1 %v362_v18, %s1968_s2  ;;  %364 = vrot.lane.b32.xlu0 %v362_v18, %s1969_s28 }
 0x5a2   :  { %v368_v19 = vpop.permute.xlu1 %367  ;;  %v365_v20 = vpop.permute.xlu0 %364 }
 0x5a3   :  { %v370_v22 = vsel %vm290_vm7, %v365_v20, %v368_v19 }
 0x5a4   :  { %v371_v23 = vmul.f32 %v2061_v14, %v370_v22 }
 0x5a6   :  { %v372_v25 = vpack.c.bf16 %v371_v23, %v371_v23 }
 0x5a8   :  { %1673 = vmatmul.mubr.msk.bf16.vlgmr.msra.gmra.mrb[0].mxu1 %vm91_vm0, %v372_v25 }
 0x5a9   :  { %1689 = vmatpush3.bf16.msra.mxu1 %v2035_v8  ;;  %1696 = vmatprep.mubr.msk.bf16.mxu1 %vm1966_vm1, %v1965_v3 }
 0x5aa   :  { %1690 = vmatprep.subr.bf16.mxu1 %v1965_v3 }
 0x5ad   :  { %1691 = vmatpush3.bf16.msra.mxu1 %v2045_v10 }
 0x5ae   :  { %1692 = vmatprep.subr.bf16.mxu1 %v1965_v3 }
 0x5b1   :  { %1693 = vmatpush3.bf16.msra.mxu1 %v2055_v12 }
 0x5b2   :  { %1694 = vmatprep.subr.bf16.mxu1 %v1965_v3 }
 0x5b5   :  { %1695 = vmatpush3.bf16.msra.mxu1 %v2067_v15 }
 0x5b6   :  { %1712 = vmatprep.subr.bf16.mxu1 %v1965_v3 }
 0x67b   :  { %v411_v26 = vpop.f32.mrb[0].mxu1 }
 0x67c   :  { %v417_v27 = vadd.f32 %v411_v26, %v2104_v21  ;;  %v1674_v29 = vpop.f32.mrb[1].mxu1 }
 0x67d   :  { %v414_v31 = vpop.f32.mrb[2].mxu1 }
 0x67e   :  { %1889 = vtanh.f32 %v417_v27  ;;  %v1675_v33 = vpop.f32.mrb[3].mxu1  ;;  %v1481_v36 = vmul.f32 -1.442695, %v417_v27 }
 0x680   :  { %1891 = vpow2.f32 %v1481_v36 }
 0x688   :  { %v1890_v35 = vpop.eup %1889 }
 0x689   :  { %427 = vrot.lane.b32.xlu0 %v1890_v35, %s1968_s2 }
 0x68a   :  { %v1892_v37 = vpop.eup %1891 }
 0x68b   :  { %v421_v38 = vadd.f32 1.0, %v1892_v37 }
 0x68d   :  { %1893 = vrcp.f32 %v421_v38 }
 0x697   :  { %v1894_v39 = vpop.eup %1893 }
 0x698   :  { %v425_v42 = vmul.f32 %v1894_v39, %v356_v13 }
 0x6fb   :  { %v428_v40 = vpop.permute.xlu0 %427 }
 0x6fc   :  { %v430_v41 = vmul.f32 %v1894_v39, %v428_v40 }
 0x6fe   :  { %432 = vrot.lane.b32.xlu1 %v430_v41, %s1969_s28 }
 0x770   :  { %v433_v43 = vpop.permute.xlu1 %432 }
 0x771   :  { %v435_v21 = vadd.f32 %v433_v43, %v425_v42 }
 0x773   :  { %1895 = vtanh.f32 %v435_v21 }
 0x77d   :  { %v1896_v44 = vpop.eup %1895 }
 0x77e   :  { %438 = vrot.lane.b32.xlu0 %v1896_v44, %s1968_s2 }
 0x7f0   :  { %v439_v45 = vpop.permute.xlu0 %438 }
 0x7f1   :  { %v441_v46 = vmul.f32 %v1894_v39, %v439_v45 }
 0x7f3   :  { %446 = vrot.lane.b32.xlu0 %v441_v46, %s1968_s2  ;;  %443 = vrot.lane.b32.xlu1 %v441_v46, %s1969_s28 }
 0x865   :  { %v447_v47 = vpop.permute.xlu0 %446  ;;  %v444_v48 = vpop.permute.xlu1 %443 }
 0x866   :  { %v449_v49 = vsel %vm290_vm7, %v444_v48, %v447_v47 }
 0x867   :  { %v450_v50 = vmul.f32 %v2061_v14, %v449_v49 }
 0x869   :  { %v451_v51 = vpack.c.bf16 %v450_v50, %v450_v50 }
 0x86b   :  { %1685 = vmatmul.mubr.msk.bf16.vlgmr.msra.gmra.mrb[16].mxu0 %vm91_vm0, %v451_v51 }
 0x86c   :  { %1701 = vmatpush3.bf16.msra.mxu0 %v2035_v8  ;;  %1708 = vmatprep.mubr.msk.bf16.mxu0 %vm1966_vm1, %v1965_v3 }
 0x86d   :  { %1702 = vmatprep.subr.bf16.mxu0 %v1965_v3 }
 0x870   :  { %1703 = vmatpush3.bf16.msra.mxu0 %v2045_v10 }
 0x871   :  { %1704 = vmatprep.subr.bf16.mxu0 %v1965_v3 }
 0x874   :  { %1705 = vmatpush3.bf16.msra.mxu0 %v2055_v12 }
 0x875   :  { %1706 = vmatprep.subr.bf16.mxu0 %v1965_v3 }
 0x878   :  { %1707 = vmatpush3.bf16.msra.mxu0 %v2067_v15 }
 0x879   :  { %1724 = vmatprep.subr.bf16.mxu0 %v1965_v3 }
 0x93e   :  { %v490_v52 = vpop.f32.mrb[16].mxu0 }
 0x93f   :  { %v496_v53 = vadd.f32 %v490_v52, %v2106_v24  ;;  %v1686_v54 = vpop.f32.mrb[17].mxu0 }
 0x940   :  { %v493_v55 = vpop.f32.mrb[18].mxu0 }
 0x941   :  { %1897 = vtanh.f32 %v496_v53  ;;  %v1687_v56 = vpop.f32.mrb[19].mxu0  ;;  %v1483_v58 = vmul.f32 -1.442695, %v496_v53 }
 0x943   :  { %1899 = vpow2.f32 %v1483_v58 }
 0x94b   :  { %v1898_v57 = vpop.eup %1897 }
 0x94c   :  { %506 = vrot.lane.b32.xlu1 %v1898_v57, %s1968_s2 }
 0x94d   :  { %v1900_v59 = vpop.eup %1899 }
 0x94e   :  { %v500_v60 = vadd.f32 1.0, %v1900_v59 }
 0x950   :  { %1901 = vrcp.f32 %v500_v60 }
 0x95a   :  { %v1902_v61 = vpop.eup %1901 }
 0x95b   :  { %v504_v0 = vmul.f32 %v1902_v61, %v435_v21 }
 0x9be   :  { %v507_v62 = vpop.permute.xlu1 %506 }
 0x9bf   :  { %v509_v63 = vmul.f32 %v1902_v61, %v507_v62 }
 0x9c1   :  { %511 = vrot.lane.b32.xlu0 %v509_v63, %s1969_s28 }
 0xa33   :  { %v512_v1 = vpop.permute.xlu0 %511 }
 0xa34   :  { %v514_v24 = vadd.f32 %v512_v1, %v504_v0 }
 0xa36   :  { %1903 = vtanh.f32 %v514_v24 }
 0xa40   :  { %v1904_v2 = vpop.eup %1903 }
 0xa41   :  { %517 = vrot.lane.b32.xlu1 %v1904_v2, %s1968_s2 }
 0xab3   :  { %v518_v4 = vpop.permute.xlu1 %517 }
 0xab4   :  { %v520_v5 = vmul.f32 %v1902_v61, %v518_v4 }
 0xab6   :  { %525 = vrot.lane.b32.xlu1 %v520_v5, %s1968_s2  ;;  %522 = vrot.lane.b32.xlu0 %v520_v5, %s1969_s28 }
 0xb28   :  { %v526_v6 = vpop.permute.xlu1 %525  ;;  %v523_v7 = vpop.permute.xlu0 %522 }
 0xb29   :  { %v528_v9 = vsel %vm290_vm7, %v523_v7, %v526_v6 }
 0xb2a   :  { %v529_v11 = vmul.f32 %v2061_v14, %v528_v9 }
 0xb2c   :  { %v530_v13 = vpack.c.bf16 %v529_v11, %v529_v11 }
 0xb2e   :  { %1697 = vmatmul.mubr.msk.bf16.vlgmr.msra.gmra.mrb[4].mxu1 %vm91_vm0, %v530_v13 }
 0xb2f   :  { %1713 = vmatpush3.bf16.msra.mxu1 %v2035_v8  ;;  %1720 = vmatprep.mubr.msk.bf16.mxu1 %vm1966_vm1, %v1965_v3 }
 0xb30   :  { %1714 = vmatprep.subr.bf16.mxu1 %v1965_v3 }
 0xb33   :  { %1715 = vmatpush3.bf16.msra.mxu1 %v2045_v10 }
 0xb34   :  { %1716 = vmatprep.subr.bf16.mxu1 %v1965_v3 }
 0xb37   :  { %1717 = vmatpush3.bf16.msra.mxu1 %v2055_v12 }
 0xb38   :  { %1718 = vmatprep.subr.bf16.mxu1 %v1965_v3 }
 0xb3b   :  { %1719 = vmatpush3.bf16.msra.mxu1 %v2067_v15 }
 0xb3c   :  { %1736 = vmatprep.subr.bf16.mxu1 %v1965_v3 }
 0xc01   :  { %v569_v16 = vpop.f32.mrb[4].mxu1 }
 0xc02   :  { %v575_v17 = vadd.f32 %v569_v16, %v2110_v30  ;;  %v1698_v18 = vpop.f32.mrb[5].mxu1 }
 0xc03   :  { %v572_v19 = vpop.f32.mrb[6].mxu1 }
 0xc04   :  { %1905 = vtanh.f32 %v575_v17  ;;  %v1699_v20 = vpop.f32.mrb[7].mxu1  ;;  %v1485_v23 = vmul.f32 -1.442695, %v575_v17 }
 0xc06   :  { %1907 = vpow2.f32 %v1485_v23 }
 0xc0e   :  { %v1906_v22 = vpop.eup %1905 }
 0xc0f   :  { %585 = vrot.lane.b32.xlu0 %v1906_v22, %s1968_s2 }
 0xc10   :  { %v1908_v25 = vpop.eup %1907 }
 0xc11   :  { %v579_v26 = vadd.f32 1.0, %v1908_v25 }
 0xc13   :  { %1909 = vrcp.f32 %v579_v26 }
 0xc1d   :  { %v1910_v27 = vpop.eup %1909 }
 0xc1e   :  { %v583_v33 = vmul.f32 %v1910_v27, %v514_v24 }
 0xc81   :  { %v586_v29 = vpop.permute.xlu0 %585 }
 0xc82   :  { %v588_v31 = vmul.f32 %v1910_v27, %v586_v29 }
 0xc84   :  { %590 = vrot.lane.b32.xlu1 %v588_v31, %s1969_s28 }
 0xcf6   :  { %v591_v35 = vpop.permute.xlu1 %590 }
 0xcf7   :  { %v593_v30 = vadd.f32 %v591_v35, %v583_v33 }
 0xcf9   :  { %1911 = vtanh.f32 %v593_v30 }
 0xd03   :  { %v1912_v36 = vpop.eup %1911 }
 0xd04   :  { %596 = vrot.lane.b32.xlu0 %v1912_v36, %s1968_s2 }
 0xd76   :  { %v597_v37 = vpop.permute.xlu0 %596 }
 0xd77   :  { %v599_v38 = vmul.f32 %v1910_v27, %v597_v37 }
 0xd79   :  { %604 = vrot.lane.b32.xlu0 %v599_v38, %s1968_s2  ;;  %601 = vrot.lane.b32.xlu1 %v599_v38, %s1969_s28 }
 0xdeb   :  { %v605_v39 = vpop.permute.xlu0 %604  ;;  %v602_v40 = vpop.permute.xlu1 %601 }
 0xdec   :  { %v607_v41 = vsel %vm290_vm7, %v602_v40, %v605_v39 }
 0xded   :  { %v608_v42 = vmul.f32 %v2061_v14, %v607_v41 }
 0xdef   :  { %v609_v43 = vpack.c.bf16 %v608_v42, %v608_v42 }
 0xdf1   :  { %1709 = vmatmul.mubr.msk.bf16.vlgmr.msra.gmra.mrb[20].mxu0 %vm91_vm0, %v609_v43  ;;  %v1855_v43 = vld [vmem:[%s2358_s4] sm:$0xff]  }
 0xdf2   :  { %1725 = vmatpush3.bf16.msra.mxu0 %v2035_v8  ;;  %1732 = vmatprep.mubr.msk.bf16.mxu0 %vm1966_vm1, %v1965_v3 }
 0xdf3   :  { %1726 = vmatprep.subr.bf16.mxu0 %v1965_v3 }
 0xdf6   :  { %1727 = vmatpush3.bf16.msra.mxu0 %v2045_v10 }
 0xdf7   :  { %1728 = vmatprep.subr.bf16.mxu0 %v1965_v3 }
 0xdfa   :  { %1729 = vmatpush3.bf16.msra.mxu0 %v2055_v12 }
 0xdfb   :  { %1730 = vmatprep.subr.bf16.mxu0 %v1965_v3 }
 0xdfe   :  { %1731 = vmatpush3.bf16.msra.mxu0 %v2067_v15 }
 0xdff   :  { %1800 = vmatprep.subr.bf16.mxu0 %v1965_v3 }
 0xec4   :  { %v648_v21 = vpop.f32.mrb[20].mxu0 }
 0xec5   :  { %v654_v8 = vadd.f32 %v648_v21, %v2114_v34  ;;  %v1710_v44 = vpop.f32.mrb[21].mxu0  ;;  %v1856_v21 = vld [vmem:[%s2358_s4 + $0x8] sm:$0xff]  }
 0xec6   :  { %v651_v45 = vpop.f32.mrb[22].mxu0 }
 0xec7   :  { %1913 = vtanh.f32 %v654_v8  ;;  %v1711_v46 = vpop.f32.mrb[23].mxu0  ;;  %v1487_v10 = vmul.f32 -1.442695, %v654_v8 }
 0xec9   :  { %1915 = vpow2.f32 %v1487_v10 }
 0xed1   :  { %v1914_v47 = vpop.eup %1913 }
 0xed2   :  { %664 = vrot.lane.b32.xlu1 %v1914_v47, %s1968_s2 }
 0xed3   :  { %v1916_v48 = vpop.eup %1915 }
 0xed4   :  { %v658_v12 = vadd.f32 1.0, %v1916_v48 }
 0xed6   :  { %1917 = vrcp.f32 %v658_v12 }
 0xee0   :  { %v1918_v49 = vpop.eup %1917 }
 0xee1   :  { %v662_v51 = vmul.f32 %v1918_v49, %v593_v30 }
 0xf44   :  { %v665_v50 = vpop.permute.xlu1 %664 }
 0xf45   :  { %v667_v15 = vmul.f32 %v1918_v49, %v665_v50 }
 0xf47   :  { %669 = vrot.lane.b32.xlu0 %v667_v15, %s1969_s28 }
 0xfb9   :  { %v670_v52 = vpop.permute.xlu0 %669 }
 0xfba   :  { %v672_v34 = vadd.f32 %v670_v52, %v662_v51 }
 0xfbc   :  { %1919 = vtanh.f32 %v672_v34 }
 0xfc6   :  { %v1920_v53 = vpop.eup %1919 }
 0xfc7   :  { %675 = vrot.lane.b32.xlu1 %v1920_v53, %s1968_s2  ;;  %v1857_v53 = vld [vmem:[%s2358_s4 + $0x10] sm:$0xff]  }
0x1039   :  { %v676_v54 = vpop.permute.xlu1 %675 }
0x103a   :  { %v678_v55 = vmul.f32 %v1918_v49, %v676_v54 }
0x103c   :  { %683 = vrot.lane.b32.xlu1 %v678_v55, %s1968_s2  ;;  %680 = vrot.lane.b32.xlu0 %v678_v55, %s1969_s28  ;;  %v1858_v55 = vld [vmem:[%s2358_s4 + $0x18] sm:$0xff]  }
0x10ae   :  { %v684_v56 = vpop.permute.xlu1 %683  ;;  %v681_v57 = vpop.permute.xlu0 %680 }
0x10af   :  { %v686_v58 = vsel %vm290_vm7, %v681_v57, %v684_v56  ;;  %v1859_v56 = vld [vmem:[%s2358_s4 + $0x20] sm:$0xff]  }
0x10b0   :  { %v687_v59 = vmul.f32 %v2061_v14, %v686_v58  ;;  %v1860_v58 = vld [vmem:[%s2358_s4 + $0x28] sm:$0xff]  }
0x10b2   :  { %v688_v60 = vpack.c.bf16 %v687_v59, %v687_v59  ;;  %v1861_v59 = vld [vmem:[%s2358_s4 + $0x30] sm:$0xff]  }
0x10b4   :  { %1721 = vmatmul.mubr.msk.bf16.vlgmr.msra.gmra.mrb[8].mxu1 %vm91_vm0, %v688_v60 }
0x10b5   :  { %1740 = vmatprep.mubr.msk.bf16.mxu1 %vm1966_vm1, %v1965_v3  ;;  %1737 = vmatpush3.bf16.msra.mxu1 %v1855_v43 }
0x10b6   :  { %1738 = vmatprep.subr.bf16.mxu1 %v1965_v3 }
0x10b9   :  { %1739 = vmatpush3.bf16.msra.mxu1 %v1856_v21 }
0x10ba   :  { %1744 = vmatprep.subr.bf16.mxu1 %v1965_v3 }
0x1187   :  { %v727_v61 = vpop.f32.mrb[8].mxu1 }
0x1188   :  { %v733_v62 = vadd.f32 %v727_v61, %v2108_v28  ;;  %v1722_v63 = vpop.f32.mrb[9].mxu1  ;;  %v1862_v61 = vld [vmem:[%s2358_s4 + $0x38] sm:$0xff]  }
0x1189   :  { %v730_v0 = vpop.f32.mrb[10].mxu1 }
0x118a   :  { %1921 = vtanh.f32 %v733_v62  ;;  %v1723_v1 = vpop.f32.mrb[11].mxu1  ;;  %v1489_v2 = vmul.f32 -1.442695, %v733_v62  ;;  %v1863_v62 = vld [vmem:[%s2358_s4 + $0x40] sm:$0xff]   ;;  %v1864_v0 = vld [vmem:[%s2358_s4 + $0x48] sm:$0xff]  }
0x118b   :  { %v1865_v1 = vld [vmem:[%s2358_s4 + $0x50] sm:$0xff]  }
0x118c   :  { %1923 = vpow2.f32 %v1489_v2  ;;  %v1866_v2 = vld [vmem:[%s2358_s4 + $0x58] sm:$0xff]  }
0x1194   :  { %v1922_v24 = vpop.eup %1921 }
0x1195   :  { %743 = vrot.lane.b32.xlu0 %v1922_v24, %s1968_s2 }
0x1196   :  { %v1924_v4 = vpop.eup %1923 }
0x1197   :  { %v737_v5 = vadd.f32 1.0, %v1924_v4  ;;  %v1867_v4 = vld [vmem:[%s2358_s4 + $0x60] sm:$0xff]  }
0x1199   :  { %1925 = vrcp.f32 %v737_v5 }
0x11a3   :  { %v1926_v6 = vpop.eup %1925 }
0x11a4   :  { %v741_v11 = vmul.f32 %v1926_v6, %v672_v34 }
0x1207   :  { %v744_v7 = vpop.permute.xlu0 %743 }
0x1208   :  { %v746_v9 = vmul.f32 %v1926_v6, %v744_v7  ;;  %v1869_v7 = vld [vmem:[%s2358_s4 + $0x70] sm:$0xff]  }
0x120a   :  { %748 = vrot.lane.b32.xlu1 %v746_v9, %s1969_s28 }
0x127c   :  { %v749_v13 = vpop.permute.xlu1 %748 }
0x127d   :  { %v751_v28 = vadd.f32 %v749_v13, %v741_v11  ;;  %v1870_v11 = vld [vmem:[%s2358_s4 + $0x78] sm:$0xff]  }
0x127f   :  { %1927 = vtanh.f32 %v751_v28 }
0x1289   :  { %v1928_v16 = vpop.eup %1927 }
0x128a   :  { %754 = vrot.lane.b32.xlu0 %v1928_v16, %s1968_s2  ;;  %v1872_v16 = vld [vmem:[%s2360_s6 + $0x8] sm:$0xff]  }
0x12fc   :  { %v755_v17 = vpop.permute.xlu0 %754 }
0x12fd   :  { %v757_v18 = vmul.f32 %v1926_v6, %v755_v17  ;;  %v1868_v6 = vld [vmem:[%s2358_s4 + $0x68] sm:$0xff]   ;;  %v1495_v17 = vld [vmem:[%s2359_s5] ss:$0 sm:$0xff]  ;;  %s1970_s5 = smov [#allocation2]  }
0x12ff   :  { %762 = vrot.lane.b32.xlu0 %v757_v18, %s1968_s2  ;;  %759 = vrot.lane.b32.xlu1 %v757_v18, %s1969_s28 }
0x1371   :  { %v763_v19 = vpop.permute.xlu0 %762  ;;  %v760_v20 = vpop.permute.xlu1 %759 }
0x1372   :  { %v765_v22 = vsel %vm290_vm7, %v760_v20, %v763_v19 }
0x1373   :  { %v766_v23 = vmul.f32 %v2061_v14, %v765_v22 }
0x1375   :  { %v767_v25 = vpack.c.bf16 %v766_v23, %v766_v23 }
0x1377   :  { %1733 = vmatmul.mubr.msk.bf16.vlgmr.msra.gmra.mrb[24].mxu0 %vm91_vm0, %v767_v25 }
0x1378   :  { %1804 = vmatprep.mubr.msk.bf16.mxu0 %vm1966_vm1, %v1965_v3 }
0x144a   :  { %v806_v26 = vpop.f32.mrb[24].mxu0 }
0x144b   :  { %v812_v27 = vadd.f32 %v806_v26, %v2112_v32  ;;  %v1734_v29 = vpop.f32.mrb[25].mxu0 }
0x144c   :  { %v809_v31 = vpop.f32.mrb[26].mxu0 }
0x144d   :  { %1929 = vtanh.f32 %v812_v27  ;;  %v1735_v33 = vpop.f32.mrb[27].mxu0  ;;  %v1491_v30 = vmul.f32 -1.442695, %v812_v27 }
0x144f   :  { %1931 = vpow2.f32 %v1491_v30 }
0x1457   :  { %v1930_v35 = vpop.eup %1929 }
0x1458   :  { %822 = vrot.lane.b32.xlu1 %v1930_v35, %s1968_s2 }
0x1459   :  { %v1932_v36 = vpop.eup %1931 }
0x145a   :  { %v816_v14 = vadd.f32 1.0, %v1932_v36 }
0x145c   :  { %1933 = vrcp.f32 %v816_v14 }
0x1466   :  { %v1934_v37 = vpop.eup %1933 }
0x1467   :  { %v820_v40 = vmul.f32 %v1934_v37, %v751_v28  ;;  %v1871_v28 = vld [vmem:[%s2360_s6] sm:$0xff]   ;;  %s1451_s6 = sshll.u32 %s1970_s5, 4  ;;  %s1452_s6 = int_to_ptr.vmem [resolvable:$true] %s1451_s6 }
0x1468   :  { %1801 = vmatpush3.bf16.msra.mxu0 %v1871_v28  ;;  %p1946_p1 = scmp.lt.s32.totalorder %s1452_s6, %s1452_s6 }
0x1469   :  { %1802 = vmatprep.subr.bf16.mxu0 %v1965_v3 }
0x146c   :  { %1803 = vmatpush3.bf16.msra.mxu0 %v1872_v16 }
0x14ca   :  { %v823_v38 = vpop.permute.xlu1 %822 }
0x14cb   :  { %v825_v39 = vmul.f32 %v1934_v37, %v823_v38 }
0x14cd   :  { %827 = vrot.lane.b32.xlu0 %v825_v39, %s1969_s28 }
0x153f   :  { %v828_v41 = vpop.permute.xlu0 %827 }
0x1540   :  { %v830_v32 = vadd.f32 %v828_v41, %v820_v40 }
0x1542   :  { %1935 = vtanh.f32 %v830_v32 }
0x154c   :  { %v1936_v42 = vpop.eup %1935 }
0x154d   :  { %833 = vrot.lane.b32.xlu1 %v1936_v42, %s1968_s2 }
0x15bf   :  { %v834_v8 = vpop.permute.xlu1 %833 }
0x15c0   :  { %v836_v44 = vmul.f32 %v1934_v37, %v834_v8 }
0x15c2   :  { %v844_v45 = vpack.c.bf16 %v836_v44, %v836_v44  ;;  %v838_v46 = vrot.slane %v836_v44, 2 }
0x15c4   :  { %850 = vrot.lane.b32.xlu0 %v844_v45, %s1969_s28  ;;  %v919_v47 = vrot.slane %v844_v45, 2  ;;  %v840_v10 = vmul.f32 %v838_v46, %v836_v44  ;;  %v841_v48 = vsub.f32 %v836_v44, %v838_v46  ;;  %v983_v12 = vrot.slane %v844_v45, 1 }
0x15c5   :  { %v1047_v49 = vrot.slane %v844_v45, 3 }
0x15c6   :  { %920 = vrot.lane.b32.xlu1 %v919_v47, %s1969_s28  ;;  %v1106_v50 = vpack.c.bf16 %v840_v10, %v840_v10  ;;  %v842_v15 = vand.u32 2147483647, %v841_v48 }
0x15c8   :  { %984 = vrot.lane.b32.xlu0 %v983_v12, %s1969_s28  ;;  %v1176_v51 = vrot.slane %v1106_v50, 2  ;;  %v1235_v52 = vpack.c.bf16 %v842_v15, %v842_v15 }
0x15ca   :  { %1048 = vrot.lane.b32.xlu1 %v1047_v49, %s1969_s28  ;;  %v1305_v34 = vrot.slane %v1235_v52, 2 }
0x15cc   :  { %1113 = vrot.lane.b32.xlu0 %v1106_v50, %s1969_s28 }
0x15ce   :  { %1177 = vrot.lane.b32.xlu1 %v1176_v51, %s1969_s28 }
0x15d0   :  { %1242 = vrot.lane.b32.xlu0 %v1235_v52, %s1969_s28 }
0x15d2   :  { %1306 = vrot.lane.b32.xlu1 %v1305_v34, %s1969_s28 }
0x1636   :  { %v851_v54 = vpop.permute.xlu0 %850 }
0x1637   :  { %1741 = vmatmul.mubr.msk.bf16.vlgmr.msra.gmra.mrb[12].mxu1 %vm290_vm7, %v851_v54 }
0x1638   :  { %1745 = vmatpush3.bf16.msra.mxu1 %v1857_v53  ;;  %1748 = vmatprep.mubr.msk.bf16.mxu1 %vm1966_vm1, %v1965_v3  ;;  %v921_v57 = vpop.permute.xlu1 %920 }
0x1639   :  { %1746 = vmatprep.subr.bf16.mxu1 %v1965_v3 }
0x163a   :  { %v985_v60 = vpop.permute.xlu0 %984 }
0x163c   :  { %1747 = vmatpush3.bf16.msra.mxu1 %v1858_v55  ;;  %v1049_v63 = vpop.permute.xlu1 %1048 }
0x163d   :  { %1752 = vmatprep.subr.bf16.mxu1 %v1965_v3 }
0x163e   :  { %v1114_v24 = vpop.permute.xlu0 %1113 }
0x1640   :  { %v1178_v5 = vpop.permute.xlu1 %1177 }
0x1642   :  { %v1243_v9 = vpop.permute.xlu0 %1242 }
0x1643   :  { %1749 = vmatmul.mubr.msk.bf16.vlgmr.msra.gmra.mrb[12].mxu1 %vm290_vm7, %v921_v57 }
0x1644   :  { %1753 = vmatpush3.bf16.msra.mxu1 %v1859_v56  ;;  %1756 = vmatprep.mubr.msk.bf16.mxu1 %vm1966_vm1, %v1965_v3  ;;  %v1307_v13 = vpop.permute.xlu1 %1306 }
0x1645   :  { %1754 = vmatprep.subr.bf16.mxu1 %v1965_v3 }
0x1648   :  { %1755 = vmatpush3.bf16.msra.mxu1 %v1860_v58 }
0x1649   :  { %1760 = vmatprep.subr.bf16.mxu1 %v1965_v3 }
0x164f   :  { %1757 = vmatmul.mubr.msk.bf16.vlgmr.msra.gmra.mrb[12].mxu1 %vm290_vm7, %v985_v60 }
0x1650   :  { %1761 = vmatpush3.bf16.msra.mxu1 %v1861_v59  ;;  %1764 = vmatprep.mubr.msk.bf16.mxu1 %vm1966_vm1, %v1965_v3 }
0x1651   :  { %1762 = vmatprep.subr.bf16.mxu1 %v1965_v3 }
0x1654   :  { %1763 = vmatpush3.bf16.msra.mxu1 %v1862_v61 }
0x1655   :  { %1768 = vmatprep.subr.bf16.mxu1 %v1965_v3 }
0x165b   :  { %1765 = vmatmul.mubr.msk.bf16.vlgmr.msra.gmra.mrb[12].mxu1 %vm290_vm7, %v1049_v63 }
0x165c   :  { %1769 = vmatpush3.bf16.msra.mxu1 %v1863_v62  ;;  %1772 = vmatprep.mubr.msk.bf16.mxu1 %vm1966_vm1, %v1965_v3 }
0x165d   :  { %1770 = vmatprep.subr.bf16.mxu1 %v1965_v3 }
0x1660   :  { %1771 = vmatpush3.bf16.msra.mxu1 %v1864_v0 }
0x1661   :  { %1776 = vmatprep.subr.bf16.mxu1 %v1965_v3 }
0x1667   :  { %1773 = vmatmul.mubr.msk.bf16.vlgmr.msra.gmra.mrb[12].mxu1 %vm290_vm7, %v1114_v24 }
0x1668   :  { %1777 = vmatpush3.bf16.msra.mxu1 %v1865_v1  ;;  %1780 = vmatprep.mubr.msk.bf16.mxu1 %vm1966_vm1, %v1965_v3 }
0x1669   :  { %1778 = vmatprep.subr.bf16.mxu1 %v1965_v3 }
0x166c   :  { %1779 = vmatpush3.bf16.msra.mxu1 %v1866_v2 }
0x166d   :  { %1784 = vmatprep.subr.bf16.mxu1 %v1965_v3 }
0x1673   :  { %1781 = vmatmul.mubr.msk.bf16.vlgmr.msra.gmra.mrb[12].mxu1 %vm290_vm7, %v1178_v5 }
0x1674   :  { %1785 = vmatpush3.bf16.msra.mxu1 %v1867_v4  ;;  %1788 = vmatprep.mubr.msk.bf16.mxu1 %vm1966_vm1, %v1965_v3 }
0x1675   :  { %1786 = vmatprep.subr.bf16.mxu1 %v1965_v3 }
0x1678   :  { %1787 = vmatpush3.bf16.msra.mxu1 %v1868_v6 }
0x1679   :  { %1792 = vmatprep.subr.bf16.mxu1 %v1965_v3 }
0x167f   :  { %1789 = vmatmul.mubr.msk.bf16.vlgmr.msra.gmra.mrb[12].mxu1 %vm290_vm7, %v1243_v9 }
0x1680   :  { %1793 = vmatpush3.bf16.msra.mxu1 %v1869_v7  ;;  %1796 = vmatprep.mubr.msk.bf16.mxu1 %vm1966_vm1, %v1965_v3 }
0x1681   :  { %1794 = vmatprep.subr.bf16.mxu1 %v1965_v3  ;;  %v1545_v3 = vld [vmem:[%s2361_s7] ss:$0 sm:$0xff]  ;;  %s1941_s7 = scalar_lea.vmem %s1452_s6, 32 }
0x1682   :  { %p1942_p0 = scmp.ne.s32.totalorder %s1452_s6, %s1941_s7  ;;  %p1947_p2 = scmp.lt.s32.totalorder %s1941_s7, %s1941_s7 }
0x1684   :  { %1795 = vmatpush3.bf16.msra.mxu1 %v1870_v11  ;;  %p1948_p3 = por %p1947_p2, %p1946_p1 }
0x1686   :  { %p1949_p4 = pnand %p1948_p3, %p1942_p0 }
0x168b   :  { %1797 = vmatmul.mubr.msk.bf16.vlgmr.msra.gmra.mrb[12].mxu1 %vm290_vm7, %v1307_v13 }
0x175e   :  { %v1357_v18 = vpop.f32.mrb[12].mxu1 }
0x175f   :  { %v1808_v19 = vadd.f32 %v1495_v17, %v1357_v18  ;;  %v1798_v20 = vpop.f32.mrb[13].mxu1 }
0x1760   :  { %v1360_v22 = vpop.f32.mrb[14].mxu1 }
0x1761   :  { %v1364_v23 = vmax.f32 %v1808_v19, 0.0  ;;  %v1799_v25 = vpop.f32.mrb[15].mxu1 }
0x1763   :  { %v1365_v26 = vpack.c.bf16 %v1364_v23, %v1364_v23 }
0x1765   :  { %1805 = vmatmul.mubr.msk.bf16.vlgmr.msra.gmra.mrb[28].mxu0 %vm290_vm7, %v1365_v26 }
0x1838   :  { %v1426_v27 = vpop.f32.mrb[28].mxu0 }
0x1839   :  { %v1427_v29 = vadd.f32 %v1545_v3, %v1426_v27  ;;  %v1806_v31 = vpop.f32.mrb[29].mxu0 }
0x183a   :  { %v1429_v33 = vpop.f32.mrb[30].mxu0 }
0x183b   :  { %v1807_v35 = vpop.f32.mrb[31].mxu0  ;;  %v1433_v30 = vsel %vm1432_vm8, %v1427_v29, -inf }
0x183c   :  { %1434 = vmax.xlane.f32.xlu0 %v1433_v30 }
0x18c9   :  { %v1435_v36 = vpop.xlane.xlu0 %1434 }
0x18ca   :  { %v1436_v14 = vsub.f32 %v1427_v29, %v1435_v36 }
0x18cc   :  { %v1437_v37 = vmul.f32 1.442695, %v1436_v14 }
0x18ce   :  { %1937 = vpow2.f32 %v1437_v37 }
0x18d8   :  { %v1938_v38 = vpop.eup %1937 }
0x18d9   :  { %v1439_v39 = vsel %vm1432_vm8, %v1938_v38, 0.0 }
0x18da   :  { %1440 = vadd.xlane.f32.xlu1 %v1439_v39 }
0x1967   :  { %v1441_v40 = vpop.xlane.xlu1 %1440 }
0x1968   :  { %1939 = vrcp.f32 %v1441_v40 }
0x1972   :  { %v1940_v41 = vpop.eup %1939 }
0x1973   :  { %v1443_v32 = vmul.f32 %v1940_v41, %v1938_v38 }
0x1975   :  { %1444 = vst [vmem:[#allocation2] sm:$0x3] %v1443_v32 }
0x1976   :  { %1952 = shalt.err (!%p1949_p4)
}
0x1977   :  { %s1953_s21 = scalar_lea.hbm %s2362_s8, 32 }
0x1978   :  { %p1954_p5 = scmp.ne.s32.totalorder %s2362_s8, %s1953_s21  ;;  %p1957_p6 = scmp.lt.u32.totalorder %s1953_s21, %s2362_s8 }
0x197a   :  { %p1959_p7 = pnand %p1957_p6, %p1954_p5 }
0x197c   :  { %1962 = shalt.err (!%p1959_p7)
}
0x197d   :  { %1454 = dma.vmem_to_hbm [thread:$0]  %s1452_s6, 32, %s2362_s8, [#allocation3]  }
0x197e   :  { %1963 = dma.done.wait [#allocation3], 32  }
0x197f   :  { %1964 = vsyncadd [#allocation3], 4294967264 }
0x1980   :  { %1458 = vsyncpa [#allocation3], 1 }

</bundles_post_ra>
